<compile_context>
chip_gen: v7x
topology: tpu7x:2x2x1
jax: 0.10.0
libtpu: 0.0.40
codegen_flags: <defaults>
</compile_context>

<pallas_src>
import math

import jax
import jax.numpy as jnp
from jax import lax
from jax.experimental import pallas as pl
from jax.experimental.pallas import tpu as pltpu

_MASK_FILL = -1000000000.0          # matches torch masked_fill(mask == 0, -1e9)
_VMEM_LIMIT = 32 * 1024 * 1024      # safe scoped limit on v5e/v6e/v7x for the tiles below
_LANE = 128


def _round_up(x, m):
    return -(-x // m) * m


def _pick_tile(dim, pref, align):
    """Largest divisor of `dim` that is a multiple of `align` and <= pref.
    `dim` is guaranteed to be a multiple of `align` by the caller, so `align`
    itself is always a legal fallback (no degenerate full-dim tiles)."""
    if dim <= pref:
        return dim
    start = pref - (pref % align)
    for t in range(start, align - 1, -align):
        if dim % t == 0:
            return t
    return align


def _make_flash_kernel(scale, has_mask, kv_len, tkv, needs_kv_bound):
    def kernel(q_ref, k_ref, v_ref, *rest):
        if has_mask:
            mask_ref, out_ref, lse_ref, m_sc, l_sc, acc_sc = rest
        else:
            out_ref, lse_ref, m_sc, l_sc, acc_sc = rest
            mask_ref = None

        ki = pl.program_id(2)

        @pl.when(ki == 0)
        def _():
            m_sc[...] = jnp.full_like(m_sc, -jnp.inf)
            l_sc[...] = jnp.zeros_like(l_sc)
            acc_sc[...] = jnp.zeros_like(acc_sc)

        # scores = (q @ k^T) * scale : native-dtype operands, f32 accumulation,
        # contraction on the last dims (no explicit k transpose in VMEM).
        s = lax.dot_general(
            q_ref[0], k_ref[0],
            (((1,), (1,)), ((), ())),
            preferred_element_type=jnp.float32,
        ) * scale
        if has_mask:
            s = jnp.where(mask_ref[0] != 0, s, _MASK_FILL)
        if needs_kv_bound:
            # Padded kv columns (S padded up to a lane multiple) masked in-kernel.
            kv_idx = ki * tkv + lax.broadcasted_iota(jnp.int32, s.shape, 1)
            s = jnp.where(kv_idx < kv_len, s, _MASK_FILL)

        # Online softmax update (f32 on the (tq, tkv) scores tile).
        m_prev = m_sc[...]
        m_new = jnp.maximum(m_prev, jnp.max(s, axis=-1, keepdims=True))
        alpha = jnp.exp(m_prev - m_new)
        p = jnp.exp(s - m_new)
        # Row-sum of p via the MXU (ones-column matmul) instead of an XLU reduction.
        ones_col = jnp.ones((s.shape[-1], 1), jnp.float32)
        p_sum = jnp.dot(p, ones_col, preferred_element_type=jnp.float32)
        l_sc[...] = alpha * l_sc[...] + p_sum
        acc_sc[...] = alpha * acc_sc[...] + jnp.dot(
            p.astype(v_ref.dtype), v_ref[0], preferred_element_type=jnp.float32
        )
        m_sc[...] = m_new

        @pl.when(ki == pl.num_programs(2) - 1)
        def _():
            l = l_sc[...]
            out_ref[0] = (acc_sc[...] / l).astype(out_ref.dtype)
            lse_ref[0] = (m_sc[...] + jnp.log(l)).astype(lse_ref.dtype)

    return kernel


def _make_probs_kernel(scale, has_mask, kv_len, tkv, needs_kv_bound):
    def kernel(q_ref, k_ref, *rest):
        if has_mask:
            mask_ref, lse_ref, attn_ref = rest
        else:
            lse_ref, attn_ref = rest
            mask_ref = None
        s = lax.dot_general(
            q_ref[0], k_ref[0],
            (((1,), (1,)), ((), ())),
            preferred_element_type=jnp.float32,
        ) * scale
        if has_mask:
            s = jnp.where(mask_ref[0] != 0, s, _MASK_FILL)
        if needs_kv_bound:
            kv_idx = pl.program_id(2) * tkv + lax.broadcasted_iota(jnp.int32, s.shape, 1)
            s = jnp.where(kv_idx < kv_len, s, _MASK_FILL)
        # softmax(s) == exp(s - logsumexp(s)); lse comes from the flash pass.
        attn_ref[0] = jnp.exp(s - lse_ref[0]).astype(attn_ref.dtype)

    return kernel


def scaled_dot_product_attention(q, k, v, mask=None, *, return_attn=True,
                                 tq_pref=512, tkv_pref=1024):
    """q, k, v: [B, S, D]; mask: [B, S, S], [1, S, S], [S, S] or None.

    Returns (output, attn_weights) like the torch module.  With
    return_attn=False (performance path) returns (output, lse[B, S, 1]) and
    never materializes the O(S^2) attention matrix.
    """
    B, S, D = q.shape
    scale = 1.0 / math.sqrt(D)
    has_mask = mask is not None
    if has_mask:
        if mask.ndim == 2:
            mask = mask[None]
        mask = mask.astype(jnp.int8)          # 4x less HBM traffic than int32
    mask_bcast = has_mask and mask.shape[0] == 1

    # ---- tiling: lane-aligned tiles; pad S instead of degenerate full-S tiles ----
    if S <= _LANE:
        S_pad, tq, tkv = S, S, S              # single full-extent tile (always legal)
    else:
        S_pad = _round_up(S, _LANE)
        tq = _pick_tile(S_pad, max(tq_pref, _LANE), _LANE)
        tkv = _pick_tile(S_pad, max(tkv_pref, _LANE), _LANE)

    needs_pad = S_pad != S
    if needs_pad:
        pad = S_pad - S
        q = jnp.pad(q, ((0, 0), (0, pad), (0, 0)))
        k = jnp.pad(k, ((0, 0), (0, pad), (0, 0)))
        v = jnp.pad(v, ((0, 0), (0, pad), (0, 0)))
        if has_mask:
            mask = jnp.pad(mask, ((0, 0), (0, pad), (0, pad)))

    nq, nkv = S_pad // tq, S_pad // tkv

    q_spec = pl.BlockSpec((1, tq, D), lambda b, qi, ki: (b, qi, 0))
    kv_spec = pl.BlockSpec((1, tkv, D), lambda b, qi, ki: (b, ki, 0))
    if has_mask:
        if mask_bcast:
            mask_spec = pl.BlockSpec((1, tq, tkv), lambda b, qi, ki: (0, qi, ki))
        else:
            mask_spec = pl.BlockSpec((1, tq, tkv), lambda b, qi, ki: (b, qi, ki))
    out_spec = pl.BlockSpec((1, tq, D), lambda b, qi, ki: (b, qi, 0))
    lse_spec = pl.BlockSpec((1, tq, 1), lambda b, qi, ki: (b, qi, 0))
    attn_spec = pl.BlockSpec((1, tq, tkv), lambda b, qi, ki: (b, qi, ki))

    in_specs = [q_spec, kv_spec, kv_spec] + ([mask_spec] if has_mask else [])
    inputs = (q, k, v) + ((mask,) if has_mask else ())

    out, lse = pl.pallas_call(
        _make_flash_kernel(scale, has_mask, S, tkv, needs_pad),
        out_shape=(
            jax.ShapeDtypeStruct((B, S_pad, D), q.dtype),
            jax.ShapeDtypeStruct((B, S_pad, 1), jnp.float32),
        ),
        grid_spec=pltpu.PrefetchScalarGridSpec(
            num_scalar_prefetch=0,
            grid=(B, nq, nkv),
            in_specs=in_specs,
            out_specs=(out_spec, lse_spec),
            scratch_shapes=[
                pltpu.VMEM((tq, 1), jnp.float32),   # running max m
                pltpu.VMEM((tq, 1), jnp.float32),   # running denom l
                pltpu.VMEM((tq, D), jnp.float32),   # output accumulator
            ],
        ),
        compiler_params=pltpu.CompilerParams(
            # batch + q-tile axes shard across TensorCores; kv is the reduction
            # axis (last, arbitrary) so the accumulators stay VMEM-resident.
            dimension_semantics=("parallel", "parallel", "arbitrary"),
            vmem_limit_bytes=_VMEM_LIMIT,
        ),
    )(*inputs)

    out_final = out[:, :S, :] if needs_pad else out
    lse_final = lse[:, :S, :] if needs_pad else lse

    if not return_attn:
        return out_final, lse_final

    probs_inputs = (q, k) + ((mask,) if has_mask else ()) + (lse,)
    probs_in_specs = [q_spec, kv_spec] + ([mask_spec] if has_mask else []) + [lse_spec]

    attn = pl.pallas_call(
        _make_probs_kernel(scale, has_mask, S, tkv, needs_pad),
        out_shape=jax.ShapeDtypeStruct((B, S_pad, S_pad), q.dtype),
        grid_spec=pltpu.PrefetchScalarGridSpec(
            num_scalar_prefetch=0,
            grid=(B, nq, nkv),
            in_specs=probs_in_specs,
            out_specs=attn_spec,
        ),
        compiler_params=pltpu.CompilerParams(
            dimension_semantics=("parallel", "parallel", "parallel"),
            vmem_limit_bytes=_VMEM_LIMIT,
        ),
    )(*probs_inputs)

    if needs_pad:
        attn = attn[:, :S, :S]
    return out_final, attn


def _reference(q, k, v, mask=None):
    d_k = q.shape[-1]
    scores = jnp.einsum("bqd,bkd->bqk", q, k) / math.sqrt(d_k)
    if mask is not None:
        scores = jnp.where(mask == 0, _MASK_FILL, scores)
    attn = jax.nn.softmax(scores, axis=-1)
    out = jnp.einsum("bqk,bkd->bqd", attn, v)
    return out, attn


if __name__ == "__main__":
    key = jax.random.PRNGKey(0)
    kq, kk, kv_, kp = jax.random.split(key, 4)

    B, S, D = 2, 8, 32  # batch, seq, head_dim
    q = jax.random.normal(kq, (B, S, D), dtype=jnp.float32)
    k = jax.random.normal(kk, (B, S, D), dtype=jnp.float32)
    v = jax.random.normal(kv_, (B, S, D), dtype=jnp.float32)

    # causal mask, broadcast per batch (1 = keep, 0 = mask)
    causal = jnp.tril(jnp.ones((S, S), dtype=jnp.int32))
    mask = jnp.broadcast_to(causal, (B, S, S))

    out, attn = scaled_dot_product_attention(q, k, v, mask)
    jax.block_until_ready((out, attn))
    ref_out, ref_attn = _reference(q, k, v, mask)
    assert jnp.allclose(out, ref_out, atol=1e-3, rtol=1e-3)
    assert jnp.allclose(attn, ref_attn, atol=1e-3, rtol=1e-3)

    # No-mask variant: skips the mask DMA and the in-kernel where entirely.
    out_nm, attn_nm = scaled_dot_product_attention(q, k, v)
    jax.block_until_ready((out_nm, attn_nm))
    ref_out_nm, ref_attn_nm = _reference(q, k, v)
    assert jnp.allclose(out_nm, ref_out_nm, atol=1e-3, rtol=1e-3)
    assert jnp.allclose(attn_nm, ref_attn_nm, atol=1e-3, rtol=1e-3)

    # Non-lane-divisible sequence length: exercises the pad + in-kernel kv-bound path.
    Sp = 200
    qp = jax.random.normal(kp, (1, Sp, D), dtype=jnp.float32)
    out_p, attn_p = scaled_dot_product_attention(qp, qp, qp)
    jax.block_until_ready((out_p, attn_p))
    ref_out_p, ref_attn_p = _reference(qp, qp, qp)
    assert out_p.shape == (1, Sp, D) and attn_p.shape == (1, Sp, Sp)
    assert jnp.allclose(out_p, ref_out_p, atol=1e-3, rtol=1e-3)
    assert jnp.allclose(attn_p, ref_attn_p, atol=1e-3, rtol=1e-3)

    print("KERNEL_OK")
</pallas_src>

<mosaic_0001>
module attributes {stable_mosaic.version = 11 : i64} {
  func.func @kernel(%arg0: i32, %arg1: i32, %arg2: i32, %arg3: memref<1x8x32xf32, #tpu.memory_space<vmem>>, %arg4: memref<1x8x32xf32, #tpu.memory_space<vmem>>, %arg5: memref<1x8x32xf32, #tpu.memory_space<vmem>>, %arg6: memref<1x8x8xi8, #tpu.memory_space<vmem>>, %arg7: memref<1x8x32xf32, #tpu.memory_space<vmem>>, %arg8: memref<1x8x1xf32, #tpu.memory_space<vmem>>, %arg9: memref<8x1xf32, #tpu.memory_space<vmem>>, %arg10: memref<8x1xf32, #tpu.memory_space<vmem>>, %arg11: memref<8x32xf32, #tpu.memory_space<vmem>>) attributes {dimension_semantics = [#tpu.dimension_semantics<parallel>, #tpu.dimension_semantics<parallel>, #tpu.dimension_semantics<arbitrary>], iteration_bounds = array<i64: 2, 1, 1>, scalar_prefetch = 0 : i64, scratch_operands = 3 : i64, tpu.core_type = #tpu.core_type<tc>, window_params = [{transform_indices = @transform_0, window_bounds = array<i64: 1, 8, 32>}, {transform_indices = @transform_1, window_bounds = array<i64: 1, 8, 32>}, {transform_indices = @transform_2, window_bounds = array<i64: 1, 8, 32>}, {transform_indices = @transform_3, window_bounds = array<i64: 1, 8, 8>}, {transform_indices = @transform_4, window_bounds = array<i64: 1, 8, 32>}, {transform_indices = @transform_5, window_bounds = array<i64: 1, 8, 1>}]} {
    %c0_i32 = arith.constant 0 : i32
    %0 = arith.cmpi eq, %arg2, %c0_i32 : i32
    %1 = arith.extui %0 : i1 to i32
    %c0_i32_0 = arith.constant 0 : i32
    %2 = arith.cmpi ne, %1, %c0_i32_0 : i32
    scf.if %2 {
      %cst_32 = arith.constant 0xFF800000 : f32
      %43 = vector.broadcast %cst_32 : f32 to vector<8x1xf32>
      %c0_33 = arith.constant 0 : index
      %c0_34 = arith.constant 0 : index
      %44 = vector.load %arg9[%c0_33, %c0_34] : memref<8x1xf32, #tpu.memory_space<vmem>>, vector<8x1xf32>
      tpu.vector_store %arg9[%c0_33, %c0_34], %43 {strides = array<i32>} : memref<8x1xf32, #tpu.memory_space<vmem>>, vector<8x1xf32>,
      %cst_35 = arith.constant 0.000000e+00 : f32
      %45 = vector.broadcast %cst_35 : f32 to vector<8x1xf32>
      %c0_36 = arith.constant 0 : index
      %c0_37 = arith.constant 0 : index
      %46 = vector.load %arg10[%c0_36, %c0_37] : memref<8x1xf32, #tpu.memory_space<vmem>>, vector<8x1xf32>
      tpu.vector_store %arg10[%c0_36, %c0_37], %45 {strides = array<i32>} : memref<8x1xf32, #tpu.memory_space<vmem>>, vector<8x1xf32>,
      %cst_38 = arith.constant 0.000000e+00 : f32
      %47 = vector.broadcast %cst_38 : f32 to vector<8x32xf32>
      %c0_39 = arith.constant 0 : index
      %c0_40 = arith.constant 0 : index
      %48 = vector.load %arg11[%c0_39, %c0_40] : memref<8x32xf32, #tpu.memory_space<vmem>>, vector<8x32xf32>
      tpu.vector_store %arg11[%c0_39, %c0_40], %47 {strides = array<i32>} : memref<8x32xf32, #tpu.memory_space<vmem>>, vector<8x32xf32>,
    } else {
    }
    %c0 = arith.constant 0 : index
    %c0_1 = arith.constant 0 : index
    %c0_2 = arith.constant 0 : index
    %3 = vector.load %arg3[%c0, %c0_1, %c0_2] : memref<1x8x32xf32, #tpu.memory_space<vmem>>, vector<1x8x32xf32>
    %4 = vector.shape_cast %3 : vector<1x8x32xf32> to vector<8x32xf32>
    %c0_3 = arith.constant 0 : index
    %c0_4 = arith.constant 0 : index
    %c0_5 = arith.constant 0 : index
    %5 = vector.load %arg4[%c0_3, %c0_4, %c0_5] : memref<1x8x32xf32, #tpu.memory_space<vmem>>, vector<1x8x32xf32>
    %6 = vector.shape_cast %5 : vector<1x8x32xf32> to vector<8x32xf32>
    %cst = arith.constant dense<0.000000e+00> : vector<8x8xf32>
    %7 = tpu.matmul %4, %6, %cst {dimension_numbers = #tpu.dot_dimension_numbers<[1], [1], [0], [0], [0, 0, 1, 0], [], []>} : vector<8x32xf32>, vector<8x32xf32>, vector<8x8xf32> -> vector<8x8xf32>
    %cst_6 = arith.constant 0.176776692 : f32
    %8 = vector.broadcast %cst_6 : f32 to vector<8x8xf32>
    %9 = arith.mulf %7, %8 : vector<8x8xf32>
    %c0_7 = arith.constant 0 : index
    %c0_8 = arith.constant 0 : index
    %c0_9 = arith.constant 0 : index
    %10 = vector.load %arg6[%c0_7, %c0_8, %c0_9] : memref<1x8x8xi8, #tpu.memory_space<vmem>>, vector<1x8x8xi8>
    %11 = vector.shape_cast %10 : vector<1x8x8xi8> to vector<8x8xi8>
    %c0_i8 = arith.constant 0 : i8
    %12 = vector.broadcast %c0_i8 : i8 to vector<8x8xi8>
    %13 = arith.cmpi ne, %11, %12 : vector<8x8xi8>
    %cst_10 = arith.constant -1.000000e+09 : f32
    %14 = vector.broadcast %cst_10 : f32 to vector<8x8xf32>
    %15 = arith.select %13, %9, %14 : vector<8x8xi1>, vector<8x8xf32>
    %c0_11 = arith.constant 0 : index
    %c0_12 = arith.constant 0 : index
    %16 = vector.load %arg9[%c0_11, %c0_12] : memref<8x1xf32, #tpu.memory_space<vmem>>, vector<8x1xf32>
    %cst_13 = arith.constant dense<0xFF800000> : vector<8xf32>
    %17 = vector.multi_reduction <maximumf>, %15, %cst_13 [1] : vector<8x8xf32> to vector<8xf32>
    %18 = vector.shape_cast %17 : vector<8xf32> to vector<8x1xf32>
    %19 = arith.maximumf %16, %18 : vector<8x1xf32>
    %20 = arith.subf %16, %19 : vector<8x1xf32>
    %21 = math.exp %20 : vector<8x1xf32>
    %22 = vector.broadcast %19 : vector<8x1xf32> to vector<8x8xf32>
    %23 = arith.subf %15, %22 : vector<8x8xf32>
    %24 = math.exp %23 : vector<8x8xf32>
    %cst_14 = arith.constant 1.000000e+00 : f32
    %25 = vector.broadcast %cst_14 : f32 to vector<8x1xf32>
    %cst_15 = arith.constant dense<0.000000e+00> : vector<8x1xf32>
    %26 = tpu.matmul %24, %25, %cst_15 {dimension_numbers = #tpu.dot_dimension_numbers<[1], [0], [0], [1], [0, 0, 1, 1], [], []>} : vector<8x8xf32>, vector<8x1xf32>, vector<8x1xf32> -> vector<8x1xf32>
    %c0_16 = arith.constant 0 : index
    %c0_17 = arith.constant 0 : index
    %27 = vector.load %arg10[%c0_16, %c0_17] : memref<8x1xf32, #tpu.memory_space<vmem>>, vector<8x1xf32>
    %28 = arith.mulf %21, %27 : vector<8x1xf32>
    %29 = arith.addf %28, %26 : vector<8x1xf32>
    %c0_18 = arith.constant 0 : index
    %c0_19 = arith.constant 0 : index
    %30 = vector.load %arg10[%c0_18, %c0_19] : memref<8x1xf32, #tpu.memory_space<vmem>>, vector<8x1xf32>
    tpu.vector_store %arg10[%c0_18, %c0_19], %29 {strides = array<i32>} : memref<8x1xf32, #tpu.memory_space<vmem>>, vector<8x1xf32>,
    %c0_20 = arith.constant 0 : index
    %c0_21 = arith.constant 0 : index
    %31 = vector.load %arg11[%c0_20, %c0_21] : memref<8x32xf32, #tpu.memory_space<vmem>>, vector<8x32xf32>
    %32 = vector.broadcast %21 : vector<8x1xf32> to vector<8x32xf32>
    %33 = arith.mulf %32, %31 : vector<8x32xf32>
    %c0_22 = arith.constant 0 : index
    %c0_23 = arith.constant 0 : index
    %c0_24 = arith.constant 0 : index
    %34 = vector.load %arg5[%c0_22, %c0_23, %c0_24] : memref<1x8x32xf32, #tpu.memory_space<vmem>>, vector<1x8x32xf32>
    %35 = vector.shape_cast %34 : vector<1x8x32xf32> to vector<8x32xf32>
    %cst_25 = arith.constant dense<0.000000e+00> : vector<8x32xf32>
    %36 = tpu.matmul %24, %35, %cst_25 {dimension_numbers = #tpu.dot_dimension_numbers<[1], [0], [0], [1], [0, 0, 1, 1], [], []>} : vector<8x8xf32>, vector<8x32xf32>, vector<8x32xf32> -> vector<8x32xf32>
    %37 = arith.addf %33, %36 : vector<8x32xf32>
    %c0_26 = arith.constant 0 : index
    %c0_27 = arith.constant 0 : index
    %38 = vector.load %arg11[%c0_26, %c0_27] : memref<8x32xf32, #tpu.memory_space<vmem>>, vector<8x32xf32>
    tpu.vector_store %arg11[%c0_26, %c0_27], %37 {strides = array<i32>} : memref<8x32xf32, #tpu.memory_space<vmem>>, vector<8x32xf32>,
    %c0_28 = arith.constant 0 : index
    %c0_29 = arith.constant 0 : index
    %39 = vector.load %arg9[%c0_28, %c0_29] : memref<8x1xf32, #tpu.memory_space<vmem>>, vector<8x1xf32>
    tpu.vector_store %arg9[%c0_28, %c0_29], %19 {strides = array<i32>} : memref<8x1xf32, #tpu.memory_space<vmem>>, vector<8x1xf32>,
    %c0_i32_30 = arith.constant 0 : i32
    %40 = arith.cmpi eq, %arg2, %c0_i32_30 : i32
    %41 = arith.extui %40 : i1 to i32
    %c0_i32_31 = arith.constant 0 : i32
    %42 = arith.cmpi ne, %41, %c0_i32_31 : i32
    scf.if %42 {
      %c0_32 = arith.constant 0 : index
      %c0_33 = arith.constant 0 : index
      %43 = vector.load %arg10[%c0_32, %c0_33] : memref<8x1xf32, #tpu.memory_space<vmem>>, vector<8x1xf32>
      %c0_34 = arith.constant 0 : index
      %c0_35 = arith.constant 0 : index
      %44 = vector.load %arg11[%c0_34, %c0_35] : memref<8x32xf32, #tpu.memory_space<vmem>>, vector<8x32xf32>
      %45 = vector.broadcast %43 : vector<8x1xf32> to vector<8x32xf32>
      %46 = arith.divf %44, %45 : vector<8x32xf32>
      %c0_36 = arith.constant 0 : index
      %c0_37 = arith.constant 0 : index
      %c0_38 = arith.constant 0 : index
      %47 = vector.load %arg7[%c0_36, %c0_37, %c0_38] : memref<1x8x32xf32, #tpu.memory_space<vmem>>, vector<1x8x32xf32>
      %48 = vector.shape_cast %47 : vector<1x8x32xf32> to vector<8x32xf32>
      %49 = vector.shape_cast %46 : vector<8x32xf32> to vector<1x8x32xf32>
      tpu.vector_store %arg7[%c0_36, %c0_37, %c0_38], %49 {strides = array<i32>} : memref<1x8x32xf32, #tpu.memory_space<vmem>>, vector<1x8x32xf32>,
      %c0_39 = arith.constant 0 : index
      %c0_40 = arith.constant 0 : index
      %50 = vector.load %arg9[%c0_39, %c0_40] : memref<8x1xf32, #tpu.memory_space<vmem>>, vector<8x1xf32>
      %51 = math.log %43 : vector<8x1xf32>
      %52 = arith.addf %50, %51 : vector<8x1xf32>
      %c0_41 = arith.constant 0 : index
      %c0_42 = arith.constant 0 : index
      %c0_43 = arith.constant 0 : index
      %53 = vector.load %arg8[%c0_41, %c0_42, %c0_43] : memref<1x8x1xf32, #tpu.memory_space<vmem>>, vector<1x8x1xf32>
      %54 = vector.shape_cast %53 : vector<1x8x1xf32> to vector<8x1xf32>
      %55 = vector.shape_cast %52 : vector<8x1xf32> to vector<1x8x1xf32>
      tpu.vector_store %arg8[%c0_41, %c0_42, %c0_43], %55 {strides = array<i32>} : memref<1x8x1xf32, #tpu.memory_space<vmem>>, vector<1x8x1xf32>,
    } else {
    }
    return
  }
  func.func @transform_0(%arg0: i32, %arg1: i32, %arg2: i32) -> (i32, i32, i32) {
    %c0_i32 = arith.constant 0 : i32
    %c0_i32_0 = arith.constant 0 : i32
    return %arg0, %arg1, %c0_i32 : i32, i32, i32
  }
  func.func @transform_1(%arg0: i32, %arg1: i32, %arg2: i32) -> (i32, i32, i32) {
    %c0_i32 = arith.constant 0 : i32
    %c0_i32_0 = arith.constant 0 : i32
    return %arg0, %arg2, %c0_i32 : i32, i32, i32
  }
  func.func @transform_2(%arg0: i32, %arg1: i32, %arg2: i32) -> (i32, i32, i32) {
    %c0_i32 = arith.constant 0 : i32
    %c0_i32_0 = arith.constant 0 : i32
    return %arg0, %arg2, %c0_i32 : i32, i32, i32
  }
  func.func @transform_3(%arg0: i32, %arg1: i32, %arg2: i32) -> (i32, i32, i32) {
    %c0_i32 = arith.constant 0 : i32
    return %arg0, %arg1, %arg2 : i32, i32, i32
  }
  func.func @transform_4(%arg0: i32, %arg1: i32, %arg2: i32) -> (i32, i32, i32) {
    %c0_i32 = arith.constant 0 : i32
    %c0_i32_0 = arith.constant 0 : i32
    return %arg0, %arg1, %c0_i32 : i32, i32, i32
  }
  func.func @transform_5(%arg0: i32, %arg1: i32, %arg2: i32) -> (i32, i32, i32) {
    %c0_i32 = arith.constant 0 : i32
    %c0_i32_0 = arith.constant 0 : i32
    return %arg0, %arg1, %c0_i32 : i32, i32, i32
  }
}

</mosaic_0001>

<bundles_post_ra>
// kernel: tpu_custom_call.1
= control target key start
LH: loop header
LB: loop body
LE: loop exit
PB: predicated region body
PF: predicated region fallthrough
CT: control target
= control target key end

     0   :  { %s1534_s0 = inlined_call_operand.hbm [shape: f32[2,8,32], index: 0, kind: input, shape index: {}]   ;;  %s1535_s1 = inlined_call_operand.hbm [shape: f32[2,8,32], index: 1, kind: input, shape index: {}]   ;;  %s1536_s2 = inlined_call_operand.hbm [shape: f32[2,8,32], index: 2, kind: input, shape index: {}]   ;;  %s1537_s3 = inlined_call_operand.vmem [shape: s8[2,8,8], index: 3, kind: input, shape index: {}]   ;;  %s1538_s4 = inlined_call_operand.hbm [shape: f32[2,8,32], index: 4, kind: output, shape index: {0}]   ;;  %s1539_s5 = inlined_call_operand.vmem [shape: f32[2,8,1], index: 5, kind: output, shape index: {1}]  }
   0x1   :  { %1549 = sst [smem:[#allocation20_spill]] %s1535_s1 }
   0x2   :  { %11 = vsyncpa [#allocation6], 0 }
   0x3   :  { %13 = vsyncpa [#allocation6 + $0x1], 0 }
   0x4   :  { %14 = vsyncpa [#allocation9], 0 }
   0x5   :  { %16 = vsyncpa [#allocation9 + $0x1], 0 }
   0x6   :  { %17 = vsyncpa [#allocation7], 0 }
   0x7   :  { %19 = vsyncpa [#allocation7 + $0x1], 0  ;;  %s1242_s18 = smov 0   ;;  %s1244_s19 = smov 0  }
   0x8   :  { %s1246_s20 = smov 0   ;;  %s1248_s21 = smov 0  }
   0x9   :  { %s1250_s22 = smov 0   ;;  %s1252_s23 = smov 0  }
   0xa LB: > { %1550 = sst [smem:[#allocation15_spill]] %s1197_s22  ;;  %s1273_s24 = sadd.s32 4294967295, %s1201_s23   ;;  %s1201_s23 = sphi %s1252_s23, %s25_s23   ;;  %s1197_s22 = sphi %s1250_s22, %s1576_s22   ;;  %s1193_s21 = sphi %s1248_s21, %s1575_s21   ;;  %s1189_s20 = sphi %s1246_s20, %s1579_s20   ;;  %s1185_s19 = sphi %s1244_s19, %s1578_s19   ;;  %s1181_s18 = sphi %s1242_s18, %s1577_s18  }
   0xb   : > { %1551 = sst [smem:[#allocation16_spill]] %s1201_s23  ;;  %s893_s25 = sadd.s32 4294967294, %s1201_s23  }
   0xc   : > { %s44_s26 = sadd.s32 1, %s1197_s22  ;;  %s53_s27 = sadd.s32 1, %s1189_s20 }
   0xd   : > { %p46_p0 = scmp.ge.s32.totalorder %s44_s26, 2  ;;  %p60_p1 = scmp.ne.s32.totalorder %s1189_s20, %s1185_s19 }
   0xe   : > { %p61_p2 = scmp.eq.s32.totalorder %s1201_s23, 0  ;;  %p66_p3 = scmp.ne.s32.totalorder %s1185_s19, %s1181_s18 }
   0xf   : > { %s1581_s26 = smov (%p46_p0, %s44_s26), 0  ;;  %p67_p5 = scmp.eq.s32.totalorder %s1273_s24, 0 }
  0x10   : > { %1552 = sst [smem:[#allocation17_spill]] %s1581_s26  ;;  %p1285_p4 = por %p61_p2, %p60_p1 }
  0x11   : > { %s48_s29 = ssub.s32 %s1197_s22, %s1581_s26  ;;  %p178_p6 = scmp.eq.s32.totalorder %s1273_s24, 1 }
  0x12   : > { %p51_p7 = scmp.eq.s32.totalorder %s48_s29, 0  ;;  %p1293_p8 = por %p67_p5, %p66_p3 }
  0x13   : > { %p1297_p9 = por %p178_p6, %p60_p1  ;;  %p184_p10 = scmp.eq.s32.totalorder %s893_s25, 1 }
  0x14   : > { %s1554_s30 = scalar_select %p1293_p8, 1, 0 }
  0x15   : > { %s1555_s6 = scalar_select %p1297_p9, 1, 0 }
  0x16   : > { %s1302_s7 = scalar_select %p51_p7, %s1189_s20, %s53_s27  }
  0x17   : > { %p1304_p11 = por %p184_p10, %p66_p3  ;;  %p960_p13 = scmp.lt.s32.totalorder %s1201_s23, 2 }
  0x18   : > { %1556 = sst [smem:[#allocation18_spill]] %s1302_s7  ;;  %s1540_s9 = sand.u32 1, %s1189_s20  }
  0x19   : > { %s1557_s8 = scalar_select %p1304_p11, 1, 0 }
  0x1a   : > { %s1313_s10 = sshll.u32 %s1540_s9, 3  ;;  %s1316_s11 = sshll.u32 %s1197_s22, 7 }
  0x1b   : > { %1558 = sst [smem:[#allocation19_spill]] %s1557_s8  ;;  %p1320_p0 = pnand %p960_p13, %p1285_p4 }
  0x1c   : > { %s251_s13 = sand.u32 1, %s1201_s23   ;;  %s1560_s1 = sld [smem:[#allocation20_spill]] }
  0x1d   : > { %s1559_s12 = scalar_select %p1320_p0, 1, 0 }
  0x1e   : > { %s255_s17 = scalar_lea.vmem [#allocation8], %s1313_s10  ;;  %s1336_s27 = scalar_lea.sflag [#allocation9], %s251_s13 }
  0x1f   : > { %s263_s25 = sshll.u32 %s255_s17, 4  ;;  %p1342_p4 = pneg %p1320_p0  ;;  %s1333_s25 = int_to_ptr.vmem [resolvable:$true] %s263_s25 }
  0x22   : > { %s1329_s16 = scalar_lea.hbm %s1560_s1, %s1316_s11  ;;  %s1030_s17 = scalar_lea.hbm %s1560_s1, 256 }
  0x23   : > { %s1025_s28 = scalar_lea.hbm %s1329_s16, 128  ;;  %p1031_p7 = scmp.lt.u32.totalorder %s1329_s16, %s1560_s1 }
  0x24   : > { %p1026_p3 = scmp.ne.s32.totalorder %s1329_s16, %s1025_s28  ;;  %p1032_p10 = scmp.lt.u32.totalorder %s1030_s17, %s1025_s28 }
  0x25   : > { %p1034_p12 = scmp.lt.u32.totalorder %s1025_s28, %s1329_s16 }
  0x26   : > { %p1028_p5 = pnand %p1342_p4, %p1026_p3  ;;  %p1033_p13 = por %p1032_p10, %p1031_p7 }
  0x28   : > { %p1029_p6 = pneg %p1028_p5  ;;  %p1035_p1 = por %p1034_p12, %p1033_p13 }
  0x2a   : > { %p1036_p2 = pnand %p1035_p1, %p1029_p6 }
  0x2c   : > { %1039 = shalt.err (!%p1036_p2)
}
  0x2d   : > { %s1040_s13 = scalar_lea.vmem %s1333_s25, 128  ;;  %s1203_s14 = smov [#allocation8]  }
  0x2e   : > { %p1041_p3 = scmp.ne.s32.totalorder %s1333_s25, %s1040_s13  ;;  %s1045_s15 = sshll.u32 %s1203_s14, 4  ;;  %s1046_s15 = int_to_ptr.vmem [resolvable:$false] %s1045_s15 }
  0x2f   : > { %s1047_s26 = scalar_lea.vmem %s1046_s15, 256  ;;  %p1048_p9 = scmp.lt.s32.totalorder %s1333_s25, %s1046_s15 }
  0x30   : > { %p1043_p5 = pnand %p1041_p3, %p1342_p4  ;;  %p1049_p8 = scmp.lt.s32.totalorder %s1047_s26, %s1040_s13 }
  0x32   : > { %p1044_p11 = pneg %p1043_p5  ;;  %p1050_p7 = por %p1049_p8, %p1048_p9 }
  0x34   : > { %p1051_p10 = pnand %p1050_p7, %p1044_p11 }
  0x36   : > { %1054 = shalt.err (!%p1051_p10)
}
  0x37   : > { %952 = dma.hbm_to_vmem [thread:$0]  (!%p1320_p0), %s1329_s16, 128, %s1333_s25, %s1336_s27  }
  0x38   : > { %p1562_p12 = scmp.lt.s32.totalorder %s1201_s23, 3  ;;  %p1563_p1 = scmp.ge.s32.totalorder %s1201_s23, 1 }
  0x39   : > { %s1378_s13 = scalar_lea.hbm %s1534_s0, %s1316_s11  ;;  %s236_s14 = scalar_lea.vmem [#allocation5], %s1313_s10 }
  0x3a   : > { %p1370_p2 = pnand %p1563_p1, %p1562_p12  ;;  %s244_s15 = sshll.u32 %s236_s14, 4  ;;  %s1381_s15 = int_to_ptr.vmem [resolvable:$true] %s244_s15 }
  0x3b   : > { %s1387_s26 = scalar_lea.hbm %s1536_s2, %s1316_s11  ;;  %s1565_s1 = sand.u32 1, %s1189_s20  }
  0x3c   : > { %s1564_s9 = scalar_select %p1370_p2, 1, 0 }
  0x3d   : > { %s233_s22 = scalar_lea.sflag [#allocation6], %s1565_s1  ;;  %s1055_s7 = scalar_lea.hbm %s1378_s13, 128 }
  0x3e   : > { %p1056_p8 = scmp.ne.s32.totalorder %s1378_s13, %s1055_s7  ;;  %s1060_s23 = scalar_lea.hbm %s1534_s0, 256 }
  0x3f   : > { %p1061_p6 = scmp.lt.u32.totalorder %s1378_s13, %s1534_s0  ;;  %p1062_p13 = scmp.lt.u32.totalorder %s1060_s23, %s1055_s7 }
  0x40   : > { %p1058_p9 = pnand %p1056_p8, %p1342_p4  ;;  %p1064_p5 = scmp.lt.u32.totalorder %s1055_s7, %s1378_s13 }
  0x41   : > { %p1063_p3 = por %p1062_p13, %p1061_p6 }
  0x42   : > { %p1059_p11 = pneg %p1058_p9 }
  0x43   : > { %p1065_p7 = por %p1064_p5, %p1063_p3 }
  0x45   : > { %p1066_p10 = pnand %p1065_p7, %p1059_p11 }
  0x47   : > { %1069 = shalt.err (!%p1066_p10)
}
  0x48   : > { %s1070_s1 = scalar_lea.vmem %s1381_s15, 128  ;;  %s1204_s11 = smov [#allocation5]  }
  0x49   : > { %p1071_p12 = scmp.ne.s32.totalorder %s1381_s15, %s1070_s1  ;;  %s1075_s16 = sshll.u32 %s1204_s11, 4  ;;  %s1076_s16 = int_to_ptr.vmem [resolvable:$false] %s1075_s16 }
  0x4a   : > { %s1077_s8 = scalar_lea.vmem %s1076_s16, 256  ;;  %p1078_p9 = scmp.lt.s32.totalorder %s1381_s15, %s1076_s16 }
  0x4b   : > { %p1073_p1 = pnand %p1071_p12, %p1342_p4  ;;  %p1079_p2 = scmp.lt.s32.totalorder %s1077_s8, %s1070_s1 }
  0x4d   : > { %p1074_p8 = pneg %p1073_p1  ;;  %p1080_p6 = por %p1079_p2, %p1078_p9 }
  0x4f   : > { %p1081_p13 = pnand %p1080_p6, %p1074_p8 }
  0x51   : > { %1084 = shalt.err (!%p1081_p13)
}
  0x52   : > { %949 = dma.hbm_to_vmem [thread:$0]  (!%p1320_p0), %s1378_s13, 128, %s1381_s15, %s233_s22  }
  0x53   : > { %s274_s23 = scalar_lea.vmem [#allocation10], %s1313_s10  ;;  %s1085_s25 = scalar_lea.hbm %s1387_s26, 128 }
  0x54   : > { %s282_s7 = sshll.u32 %s274_s23, 4  ;;  %p1086_p11 = scmp.ne.s32.totalorder %s1387_s26, %s1085_s25  ;;  %s283_s7 = int_to_ptr.vmem [resolvable:$true] %s282_s7 }
  0x55   : > { %s1090_s14 = scalar_lea.hbm %s1536_s2, 256  ;;  %p1091_p5 = scmp.lt.u32.totalorder %s1387_s26, %s1536_s2 }
  0x56   : > { %p1088_p2 = pnand %p1086_p11, %p1342_p4  ;;  %p1092_p7 = scmp.lt.u32.totalorder %s1090_s14, %s1085_s25 }
  0x57   : > { %p1094_p12 = scmp.lt.u32.totalorder %s1085_s25, %s1387_s26 }
  0x58   : > { %p1089_p3 = pneg %p1088_p2  ;;  %p1093_p10 = por %p1092_p7, %p1091_p5 }
  0x5a   : > { %p1095_p1 = por %p1094_p12, %p1093_p10 }
  0x5c   : > { %p1096_p8 = pnand %p1095_p1, %p1089_p3 }
  0x5e   : > { %1099 = shalt.err (!%p1096_p8)
}
  0x5f   : > { %s1100_s22 = scalar_lea.vmem %s283_s7, 128  ;;  %s1205_s10 = smov [#allocation10]  }
  0x60   : > { %p1101_p9 = scmp.ne.s32.totalorder %s283_s7, %s1100_s22  ;;  %s1105_s13 = sshll.u32 %s1205_s10, 4  ;;  %s1106_s13 = int_to_ptr.vmem [resolvable:$false] %s1105_s13 }
  0x61   : > { %s1107_s15 = scalar_lea.vmem %s1106_s13, 256  ;;  %p1108_p11 = scmp.lt.s32.totalorder %s283_s7, %s1106_s13 }
  0x62   : > { %p1103_p6 = pnand %p1101_p9, %p1342_p4  ;;  %p1109_p2 = scmp.lt.s32.totalorder %s1107_s15, %s1100_s22 }
  0x64   : > { %p1104_p13 = pneg %p1103_p6  ;;  %p1110_p0 = por %p1109_p2, %p1108_p11 }
  0x66   : > { %p1111_p5 = pnand %p1110_p0, %p1104_p13 }
  0x68   : > { %1114 = shalt.err (!%p1111_p5)
}
  0x69   : > { %p1566_p7 = scmp.ne.s32.totalorder %s1559_s12, 0  ;;  %p1567_p3 = scmp.ne.s32.totalorder %s1564_s9, 0 }
  0x6a   : > { %s1434_s29 = sand.u32 (!%p1567_p3), 1, %s1185_s19   ;;  %p1568_p0 = scmp.ne.s32.totalorder (!%p1567_p3), %s1554_s30, 0 }
  0x6b   : > { %955 = dma.hbm_to_vmem [thread:$0]  (!%p1566_p7), %s1387_s26, 128, %s283_s7, %s1336_s27  }
  0x6c   : > { %304 = sbr.rel (%p1567_p3) target bundleno = 1005 (0x3ed), region = 36  ;;  %s1437_s16 = sshll.u32 (!%p1567_p3), %s1434_s29, 3 }
  0x6d   : > { %s307_s8 = scalar_lea.sflag (!%p1567_p3), [#allocation6], %s1434_s29  ;;  %s310_s23 = scalar_lea.vmem (!%p1567_p3), [#allocation5], %s1437_s16 }
  0x73   : > { %1168 = dma.done.wait (%p1568_p0), %s307_s8, 128  }
  0x74   : > { %1170 = vsyncadd (%p1568_p0), %s307_s8, 4294967168  ;;  %s315_s12 = sand.u32 1, %s1273_s24   ;;  %s319_s9 = scalar_lea.vmem [#allocation8], %s1437_s16 }
  0x75   : > { %s316_s27 = scalar_lea.sflag [#allocation9], %s315_s12 }
  0x76   : > { %1172 = dma.done.wait (%p1568_p0), %s316_s27, 256  }
  0x77   : > { %1174 = vsyncadd (%p1568_p0), %s316_s27, 4294967040  ;;  %vm408_vm0 = vcmask 261120   ;;  %v1206_v0 = vmov 0.0   ;;  %vm1207_vm1 = vmmov 0   ;;  %v411_v1 = vld [vmem:[%s319_s9] sm:$0xff]  ;;  %v410_v2 = vld [vmem:[%s310_s23] sm:$0xff] }
  0x78   : > { %923 = vmatprep.subr.mxu0 %v1206_v0  ;;  %409 = vst.msk [vmem:[#allocation4] sm:$0xff] %vm408_vm0, %v1206_v0  ;;  %925 = vmatprep.mubr.msk.f32.mxu0 %vm1207_vm1, %v1206_v0  ;;  %v1208_v3 = vmov 0   ;;  %vm405_vm2 = vcmask 7168   ;;  %v1209_v4 = vmov -inf   ;;  %p382_p4 = scmp.lt.s32.totalorder %s1193_s21, 1  ;;  %vm497_vm5 = vcmask 64512  }
  0x79   : > { %928 = vmatprep.subr.mxu1 %v1206_v0  ;;  %930 = vmatprep.mubr.msk.f32.mxu1 %vm1207_vm1, %v1206_v0  ;;  %406 = vst.msk [vmem:[#allocation2] sm:$0xff] %vm405_vm2, %v1209_v4  ;;  %407 = vst.msk [vmem:[#allocation3] sm:$0xff] %vm405_vm2, %v1206_v0  ;;  %v1210_v18 = vmov 1.0   ;;  %s328_s28 = scalar_lea.vmem [#allocation10], %s1437_s16  ;;  %s914_s22 = sshll.u32 %s1193_s21, 7 }
  0x7a   : > { %924 = vmatpush3.xpose.msk.msra.mxu0 %vm408_vm0, %v411_v1  ;;  %1015 = vset.pattern.permute.xlu0 %v1208_v3  ;;  %s1460_s24 = scalar_select %p382_p4, %s1193_s21, 1  ;;  %v598_v23 = vld [vmem:[%s328_s28] sm:$0xff] }
  0x7b   : > { %1016 = vset.pattern.permute.xlu1 %v1208_v3  ;;  %929 = vmatpush3.msra.mxu1 %v1210_v18  ;;  %s372_s10 = scalar_lea.vmem [#allocation11], %s1437_s16  ;;  %s1484_s23 = scalar_lea.hbm %s1538_s4, %s914_s22 }
  0x7c   : > { %s907_s30 = sshll.u32 %s1460_s24, 1  ;;  %933 = vmatprep.subr.mxu1 %v1206_v0  ;;  %s908_s17 = sshll.u32 %s1460_s24, 3 }
  0x7d   : > { %926 = vmatmul.mubr.msk.f32.vlgmr.msra.gmra.mrb[0].mxu0 %vm408_vm0, %v410_v2  ;;  %s391_s25 = scalar_lea.vmem %s1537_s3, %s907_s30  ;;  %s398_s11 = scalar_lea.vmem %s1539_s5, %s908_s17 }
  0x7e   : > { %v490_v5 = vld [vmem:[%s391_s25] sm:$0x3]  ;;  %s712_s13 = sshll.u32 %s372_s10, 4  ;;  %s691_s12 = scalar_lea.sflag [#allocation7], %s1434_s29  ;;  %s1486_s13 = int_to_ptr.vmem [resolvable:$true] %s712_s13 }
  0x7f   : > { %vm491_vm3 = vnez %v490_v5  ;;  %v591_v27 = vld [vmem:[#allocation4] sm:$0xff]  ;;  %s1115_s27 = scalar_lea.vmem %s1486_s13, 128  ;;  %p1569_p12 = scmp.ne.s32.totalorder %s1555_s6, 0 }
  0x80   : > { %v492_v6 = vsel %vm491_vm3, 16843009, %v1208_v3  ;;  %v496_v13 = vld [vmem:[#allocation2] sm:$0xff]  ;;  %v586_v25 = vld [vmem:[#allocation3] sm:$0xff]  ;;  %p1116_p10 = scmp.ne.s32.totalorder %s1486_s13, %s1115_s27  ;;  %s1211_s21 = smov [#allocation11]  }
  0x81   : > { %v493_v7 = vunpack.c.0.s8 %v492_v6  ;;  %s1119_s16 = sshll.u32 %s1211_s21, 4  ;;  %s1120_s16 = int_to_ptr.vmem [resolvable:$false] %s1119_s16 }
  0x82   : > { %p1117_p1 = pnand %p1116_p10, %p1569_p12  ;;  %s1121_s9 = scalar_lea.vmem %s1120_s16, 256 }
  0x83   : > { %vm494_vm4 = vcmp.ne.s32.totalorder %v493_v7, 0  ;;  %p1122_p9 = scmp.lt.s32.totalorder %s1486_s13, %s1120_s16  ;;  %p1123_p6 = scmp.lt.s32.totalorder %s1121_s9, %s1115_s27 }
  0x84   : > { %p1118_p8 = pneg %p1117_p1 }
  0x85   : > { %p1124_p13 = por %p1123_p6, %p1122_p9 }
  0x87   : > { %p1125_p11 = pnand %p1124_p13, %p1118_p8 }
 0x150   : > { %v485_v8 = vpop.f32.mrb[0].mxu0 }
 0x151   : > { %v489_v9 = vmul.f32 0.17677669, %v485_v8  ;;  %v927_v10 = vpop.f32.mrb[1].mxu0 }
 0x153   : > { %v495_v11 = vsel %vm494_vm4, %v489_v9, -1e+09 }
 0x154   : > { %v498_v12 = vsel %vm497_vm5, %v495_v11, -inf }
 0x155   : > { %499 = vmax.xlane.f32.xlu0 %v498_v12 }
 0x1e2   : > { %v500_v14 = vpop.xlane.xlu0 %499 }
 0x1e3   : > { %v501_v15 = vmax.f32 %v496_v13, %v500_v14 }
 0x1e5   : > { %v502_v16 = vsub.f32 %v496_v13, %v501_v15  ;;  %671 = vst.msk [vmem:[#allocation2] sm:$0xff] %vm405_vm2, %v501_v15  ;;  %507 = vperm.xlu0 %1015, %v501_v15  }
 0x1e7   : > { %v503_v17 = vmul.f32 1.442695, %v502_v16 }
 0x1e9   : > { %1017 = vpow2.f32 %v503_v17 }
 0x1ec   : > { %v685_v39 = vld [vmem:[#allocation2] sm:$0xff] }
 0x1f3   : > { %v1018_v19 = vpop.eup %1017 }
 0x1f4   : > { %594 = vperm.xlu1 %1016, %v1018_v19   ;;  %v587_v26 = vmul.f32 %v1018_v19, %v586_v25 }
 0x264   : > { %v508_v20 = vpop.permute.xlu0 %507 }
 0x265   : > { %v510_v21 = vsub.f32 %v495_v11, %v508_v20 }
 0x267   : > { %v511_v22 = vmul.f32 1.442695, %v510_v21 }
 0x269   : > { %1019 = vpow2.f32 %v511_v22 }
 0x273   : > { %v1020_v24 = vpop.eup %1019  ;;  %v595_v28 = vpop.permute.xlu1 %594 }
 0x274   : > { %931 = vmatmul.mubr.msk.f32.vlgmr.msra.gmra.mrb[0].mxu1 %vm497_vm5, %v1020_v24  ;;  %v597_v32 = vmul.f32 %v595_v28, %v591_v27 }
 0x275   : > { %934 = vmatpush3.msra.mxu1 %v598_v23  ;;  %935 = vmatprep.mubr.msk.f32.mxu1 %vm1207_vm1, %v1206_v0 }
 0x278   : > { %936 = vmatmul.mubr.msk.f32.vlgmr.msra.gmra.mrb[2].mxu1 %vm497_vm5, %v1020_v24 }
 0x347   : > { %v582_v29 = vpop.f32.mrb[0].mxu1 }
 0x348   : > { %v588_v30 = vadd.f32 %v587_v26, %v582_v29  ;;  %v932_v31 = vpop.f32.mrb[1].mxu1 }
 0x34a   : > { %590 = vst.msk [vmem:[#allocation3] sm:$0xff] %vm405_vm2, %v588_v30 }
 0x34b   : > { %v665_v33 = vpop.f32.mrb[2].mxu1 }
 0x34c   : > { %v669_v34 = vadd.f32 %v665_v33, %v597_v32  ;;  %v937_v35 = vpop.f32.mrb[3].mxu1 }
 0x34e   : > { %670 = vst.msk [vmem:[#allocation4] sm:$0xff] %vm408_vm0, %v669_v34 }
 0x351   : > { %v675_v36 = vld [vmem:[#allocation3] sm:$0xff] }
 0x352   : > { %679 = vperm.xlu1 %1016, %v675_v36   ;;  %1021 = vlog2.f32 %v675_v36 }
 0x355   : > { %v676_v43 = vld [vmem:[#allocation4] sm:$0xff] }
 0x35c   : > { %v1022_v37 = vpop.eup %1021 }
 0x35d   : > { %v687_v38 = vmul.f32 0.6931472, %v1022_v37 }
 0x35f   : > { %v688_v40 = vadd.f32 %v687_v38, %v685_v39 }
 0x361   : > { %689 = vst.msk [vmem:[%s398_s11] sm:$0xff] %vm405_vm2, %v688_v40 }
 0x3d1   : > { %v680_v41 = vpop.permute.xlu1 %679 }
 0x3d2   : > { %1023 = vrcp.f32 %v680_v41 }
 0x3dc   : > { %v1024_v42 = vpop.eup %1023 }
 0x3dd   : > { %v683_v44 = vmul.f32 %v1024_v42, %v676_v43 }
 0x3df   : > { %684 = vst.msk [vmem:[%s372_s10] sm:$0xff] %vm408_vm0, %v683_v44 }
 0x3e0   : > { %1128 = shalt.err (!%p1125_p11)
}
 0x3e1   : > { %s1129_s29 = scalar_lea.hbm %s1484_s23, 128  ;;  %s1133_s26 = scalar_lea.hbm %s1538_s4, 256 }
 0x3e2   : > { %p1130_p2 = scmp.ne.s32.totalorder %s1484_s23, %s1129_s29  ;;  %p1134_p3 = scmp.lt.u32.totalorder %s1484_s23, %s1538_s4 }
 0x3e3   : > { %p1135_p0 = scmp.lt.u32.totalorder %s1133_s26, %s1129_s29  ;;  %p1137_p10 = scmp.lt.u32.totalorder %s1129_s29, %s1484_s23 }
 0x3e4   : > { %p1131_p5 = pnand %p1130_p2, %p1569_p12 }
 0x3e5   : > { %p1136_p4 = por %p1135_p0, %p1134_p3 }
 0x3e6   : > { %p1132_p7 = pneg %p1131_p5 }
 0x3e7   : > { %p1138_p1 = por %p1137_p10, %p1136_p4 }
 0x3e9   : > { %p1139_p8 = pnand %p1138_p1, %p1132_p7 }
 0x3eb   : > { %1142 = shalt.err (!%p1139_p8)
}
 0x3ec   : > { %944 = dma.vmem_to_hbm [thread:$0]  (%p1569_p12), %s1486_s13, 128, %s1484_s23, %s691_s12  }
 0x3ed PF: > { %s1570_s28 = sld [smem:[#allocation19_spill]]  ;;  %s1571_s17 = sld [smem:[#allocation16_spill]] }
 0x3ee   : > { %s727_s14 = sand.u32 1, %s1181_s18  }
 0x3ef   : > { %s728_s1 = scalar_lea.sflag [#allocation7], %s727_s14 }
 0x3f3   : > { %p1572_p9 = scmp.ne.s32.totalorder %s1570_s28, 0  ;;  %p1573_p6 = scmp.ge.s32.totalorder %s1571_s17, 2 }
 0x3f5   : > { %p957_p13 = pnand %p1573_p6, %p1572_p9 }
 0x3f7   : > { %1176 = dma.done.wait (!%p957_p13), %s728_s1, 128  }
 0x3f8   : > { %1178 = vsyncadd (!%p957_p13), %s728_s1, 4294967168  ;;  %s25_s23 = sadd.s32 1, %s1571_s17   ;;  %s1574_s6 = sld [smem:[#allocation18_spill]] }
 0x3f9   : > { %p22_p11 = scmp.ge.s32.totalorder %s25_s23, 4   ;;  %s1575_s21 = sld [smem:[#allocation15_spill]] }
 0x3fa   : > { %s1576_s22 = sld [smem:[#allocation17_spill]]  ;;  %s1577_s18 = smov %s1185_s19 }
 0x3fb   : > { %s1578_s19 = smov %s1189_s20  ;;  %24 = sbr.rel (!%p22_p11) target bundleno = 10 (0xa), region = 128 }
 0x3fe   : > { %s1579_s20 = smov %s1574_s6 }
 0x402   :  { %743 = vsyncpa [#allocation6], 1 }
 0x403   :  { %745 = vsyncpa [#allocation6 + $0x1], 1 }
 0x404   :  { %746 = vsyncpa [#allocation9], 1 }
 0x405   :  { %748 = vsyncpa [#allocation9 + $0x1], 1 }
 0x406   :  { %749 = vsyncpa [#allocation7], 1 }
 0x407   :  { %751 = vsyncpa [#allocation7 + $0x1], 1 }

</bundles_post_ra>
